<compile_context>
chip_gen: v7x
topology: tpu7x:2x2x1
jax: 0.10.0
libtpu: 0.0.40
codegen_flags: <defaults>
</compile_context>

<pallas_src>
import functools

import jax
import jax.numpy as jnp
from jax.experimental import pallas as pl
from jax.experimental.pallas import tpu as pltpu


def _round_up(a, b):
    return (a + b - 1) // b * b


# ---------------------------------------------------------------------------
# Pallas kernel: channel softmax + chunked spatial reductions.
# ---------------------------------------------------------------------------
def _reduce_kernel(x_ref, lab_ref, rw_ref, out_ref, *, C, HW, chunk, padded):
    """Grid = (B, n_chunks); chunk axis is the reduction ("arbitrary") axis.

    x_ref   : (1, C, chunk)  logits (any float dtype)
    lab_ref : (1, 1, chunk)  int32 labels
    rw_ref  : (1, C, chunk)  bf16 rrwmap
    out_ref : (1, R, 128)    f32 accumulator slab, resident across chunks:
              out[0, c, 0] = 2 * sum_sp(softmax(x)[c] * onehot(y)[c])
              out[0, c, 1] =     sum_sp(softmax(x)[c] + onehot(y)[c])
              out[0, c, 2] =     sum_sp(softmax(x)[c] * rrwmap[c])
    """
    s = pl.program_id(1)

    @pl.when(s == 0)
    def _init():
        out_ref[...] = jnp.zeros_like(out_ref)

    x = x_ref[0].astype(jnp.float32)          # (C, chunk)
    lab = lab_ref[0]                          # (1, chunk) int32
    rw = rw_ref[0].astype(jnp.float32)        # (C, chunk)

    # softmax over the channel (sublane) axis; EUP reciprocal + VPU multiply
    m = jnp.max(x, axis=0, keepdims=True)
    e = jnp.exp(x - m)
    denom = jnp.sum(e, axis=0, keepdims=True)
    sm = e * pl.reciprocal(denom, approx=True)

    # one-hot along channels as a boolean mask (no float one-hot materialized)
    cidx = jax.lax.broadcasted_iota(jnp.int32, (C, chunk), 0)
    onehot = cidx == lab                      # (C, chunk) bool

    if padded:
        # mask spatial padding columns (only generated when HW % chunk != 0)
        col = s * chunk + jax.lax.broadcasted_iota(jnp.int32, (1, chunk), 1)
        valid = col < HW
        onehot = jnp.logical_and(onehot, valid)
        sm = jnp.where(valid, sm, 0.0)

    num_cs = 2.0 * jnp.sum(jnp.where(onehot, sm, 0.0), axis=1, keepdims=True)
    den_cs = (jnp.sum(sm, axis=1, keepdims=True)
              + jnp.sum(onehot.astype(jnp.float32), axis=1, keepdims=True))
    rws_cs = jnp.sum(sm * rw, axis=1, keepdims=True)

    # tiny masked RMWs into the VMEM-resident slab (channels on sublanes,
    # {num, den, rws} on lanes 0..2)
    out_ref[0, 0:C, 0:1] += num_cs
    out_ref[0, 0:C, 1:2] += den_cs
    out_ref[0, 0:C, 2:3] += rws_cs


def _pick_chunk(C, HW):
    """Spatial (lane) chunk: multiple of 128, sized so the per-step f32 x-block
    stays ~2 MiB -> fits v5e (16 MiB) / v7x (32 MiB) scoped-VMEM defaults even
    with double-buffered input streams; capped at 8192 lanes."""
    hw128 = _round_up(HW, 128)
    max_chunk = max(128, ((2 * 1024 * 1024) // (4 * max(C, 1))) // 128 * 128)
    return min(hw128, max_chunk, 8192)


def _loss_blocks(xf, lab, rrw, C, HW):
    B = xf.shape[0]
    chunk = _pick_chunk(C, HW)
    n_chunks = (HW + chunk - 1) // chunk
    hw_pad = n_chunks * chunk
    padded = hw_pad != HW
    if padded:
        pad = ((0, 0), (0, 0), (0, hw_pad - HW))
        xf = jnp.pad(xf, pad)
        lab = jnp.pad(lab, pad)
        rrw = jnp.pad(rrw, pad)

    R = _round_up(C, 8)
    slab = pl.pallas_call(
        functools.partial(_reduce_kernel, C=C, HW=HW, chunk=chunk, padded=padded),
        out_shape=jax.ShapeDtypeStruct((B, R, 128), jnp.float32),
        grid_spec=pltpu.PrefetchScalarGridSpec(
            num_scalar_prefetch=0,
            grid=(B, n_chunks),
            in_specs=[
                pl.BlockSpec((1, C, chunk), lambda b, s: (b, 0, s)),
                pl.BlockSpec((1, 1, chunk), lambda b, s: (b, 0, s)),
                pl.BlockSpec((1, C, chunk), lambda b, s: (b, 0, s)),
            ],
            out_specs=pl.BlockSpec((1, R, 128), lambda b, s: (b, 0, 0)),
        ),
        compiler_params=pltpu.CompilerParams(
            dimension_semantics=("parallel", "arbitrary")),
    )(xf, lab, rrw)

    num = slab[:, :C, 0]
    den = slab[:, :C, 1]
    rws = slab[:, :C, 2]
    return num, den, rws


# ---------------------------------------------------------------------------
# Exact separable Euclidean distance transform (plain JAX preprocessing).
# ---------------------------------------------------------------------------
def _edt_sq(bg):
    """Exact squared Euclidean distance to the nearest True pixel of `bg`.
    Separable two-pass decomposition: per-column 1-D distance, then a per-row
    lower-envelope min -> O(H*W*W) instead of O((H*W)^2)."""
    H, W = bg.shape
    big = jnp.float32(H + W)
    ridx = jnp.arange(H, dtype=jnp.float32)[:, None]
    above = jnp.where(bg, ridx, -jnp.inf)
    d_up = ridx - jax.lax.cummax(above, axis=0)
    below = jnp.where(bg, ridx, jnp.inf)
    d_dn = jax.lax.cummin(below, axis=0, reverse=True) - ridx
    g = jnp.minimum(jnp.minimum(d_up, d_dn), big)             # (H, W)
    g2 = g * g
    cols = jnp.arange(W, dtype=jnp.float32)
    offs2 = (cols[:, None] - cols[None, :]) ** 2              # (W, W')
    return jnp.min(g2[:, None, :] + offs2[None, :, :], axis=-1)   # (H, W)


def _rrwmap(lab_hw, C):
    """rrwmap of RWLoss: per-(b, c) EDT of the one-hot map, negated + normalized,
    zeros replaced by 1.  Batch is lax.map'ed to bound intermediate memory."""

    def per_batch(lab2d):
        def per_channel(c):
            bg = lab2d != c
            d2 = _edt_sq(bg)
            has_bg = jnp.any(bg)
            # TODO(synk): scipy's behavior with no background pixel is
            # degenerate; fall back to a zero map (-> all ones after the ==0 fix).
            d = jnp.where(has_bg, jnp.sqrt(d2), 0.0)
            r = -(d / jnp.max(d + 1e-15))
            return jnp.where(r == 0.0, 1.0, r)

        return jax.vmap(per_channel)(jnp.arange(C))

    return jax.lax.map(per_batch, lab_hw)       # (B, C, H, W)


# ---------------------------------------------------------------------------
# Public loss.
# ---------------------------------------------------------------------------
@functools.partial(jax.jit, static_argnames=("e",))
def rw_gradual_dice_loss(x, y_, e):
    """x: (B, C, H, W) float logits; y_: (B, 1, H, W) integer labels; e: epoch."""
    B, C, H, W = x.shape
    HW = H * W

    lab_hw = y_.reshape(B, H, W).astype(jnp.int32)
    rrw = _rrwmap(lab_hw, C).reshape(B, C, HW).astype(jnp.bfloat16)

    xf = x.reshape(B, C, HW)                    # keep input dtype; cast in-kernel
    lab = lab_hw.reshape(B, 1, HW)

    num, den, rws = _loss_blocks(xf, lab, rrw, C, HW)   # (B, C) each

    dice_loss = 1.0 - jnp.mean(num / (den + 1e-6))
    rw_loss = jnp.sum(rws) / (B * C * HW)

    alpha = max((100.0 - float(e)) / 100.0, 0.01)
    return alpha * dice_loss + (1.0 - alpha) * rw_loss


if __name__ == "__main__":
    key = jax.random.PRNGKey(0)
    kx, ky = jax.random.split(key)

    B, C, H, W = 2, 4, 16, 16
    x = jax.random.normal(kx, (B, C, H, W), dtype=jnp.float32)
    y_ = jax.random.randint(ky, (B, 1, H, W), 0, C, dtype=jnp.int32)
    e = 10  # epoch -> alpha = 0.9

    loss = rw_gradual_dice_loss(x, y_, e)
    jax.block_until_ready(loss)
    assert loss.shape == () and jnp.isfinite(loss)
    print("KERNEL_OK")
</pallas_src>

<mosaic_0001>
module attributes {stable_mosaic.version = 11 : i64} {
  func.func @_reduce_kernel(%arg0: i32, %arg1: i32, %arg2: memref<1x4x256xf32, #tpu.memory_space<vmem>>, %arg3: memref<1x1x256xi32, #tpu.memory_space<vmem>>, %arg4: memref<1x4x256xbf16, #tpu.memory_space<vmem>>, %arg5: memref<1x8x128xf32, #tpu.memory_space<vmem>>) attributes {dimension_semantics = [#tpu.dimension_semantics<parallel>, #tpu.dimension_semantics<arbitrary>], iteration_bounds = array<i64: 2, 1>, scalar_prefetch = 0 : i64, scratch_operands = 0 : i64, tpu.core_type = #tpu.core_type<tc>, window_params = [{transform_indices = @transform_0, window_bounds = array<i64: 1, 4, 256>}, {transform_indices = @transform_1, window_bounds = array<i64: 1, 1, 256>}, {transform_indices = @transform_2, window_bounds = array<i64: 1, 4, 256>}, {transform_indices = @transform_3, window_bounds = array<i64: 1, 8, 128>}]} {
    %c0_i32 = arith.constant 0 : i32
    %0 = arith.cmpi eq, %arg1, %c0_i32 : i32
    %1 = arith.extui %0 : i1 to i32
    %c0_i32_0 = arith.constant 0 : i32
    %2 = arith.cmpi ne, %1, %c0_i32_0 : i32
    scf.if %2 {
      %cst_32 = arith.constant 0.000000e+00 : f32
      %57 = vector.broadcast %cst_32 : f32 to vector<1x8x128xf32>
      %c0_33 = arith.constant 0 : index
      %c0_34 = arith.constant 0 : index
      %c0_35 = arith.constant 0 : index
      %58 = vector.load %arg5[%c0_33, %c0_34, %c0_35] : memref<1x8x128xf32, #tpu.memory_space<vmem>>, vector<1x8x128xf32>
      tpu.vector_store %arg5[%c0_33, %c0_34, %c0_35], %57 {strides = array<i32>} : memref<1x8x128xf32, #tpu.memory_space<vmem>>, vector<1x8x128xf32>,
    } else {
    }
    %c0 = arith.constant 0 : index
    %c0_1 = arith.constant 0 : index
    %c0_2 = arith.constant 0 : index
    %3 = vector.load %arg2[%c0, %c0_1, %c0_2] : memref<1x4x256xf32, #tpu.memory_space<vmem>>, vector<1x4x256xf32>
    %4 = vector.shape_cast %3 : vector<1x4x256xf32> to vector<4x256xf32>
    %c0_3 = arith.constant 0 : index
    %c0_4 = arith.constant 0 : index
    %c0_5 = arith.constant 0 : index
    %5 = vector.load %arg3[%c0_3, %c0_4, %c0_5] : memref<1x1x256xi32, #tpu.memory_space<vmem>>, vector<1x1x256xi32>
    %6 = vector.shape_cast %5 : vector<1x1x256xi32> to vector<1x256xi32>
    %c0_6 = arith.constant 0 : index
    %c0_7 = arith.constant 0 : index
    %c0_8 = arith.constant 0 : index
    %7 = vector.load %arg4[%c0_6, %c0_7, %c0_8] : memref<1x4x256xbf16, #tpu.memory_space<vmem>>, vector<1x4x256xbf16>
    %8 = vector.shape_cast %7 : vector<1x4x256xbf16> to vector<4x256xbf16>
    %9 = arith.extf %8 : vector<4x256xbf16> to vector<4x256xf32>
    %cst = arith.constant dense<0xFF800000> : vector<256xf32>
    %10 = vector.multi_reduction <maximumf>, %4, %cst [0] : vector<4x256xf32> to vector<256xf32>
    %11 = vector.shape_cast %10 : vector<256xf32> to vector<1x256xf32>
    %12 = vector.broadcast %11 : vector<1x256xf32> to vector<4x256xf32>
    %13 = arith.subf %4, %12 : vector<4x256xf32>
    %14 = math.exp %13 : vector<4x256xf32>
    %cst_9 = arith.constant dense<0.000000e+00> : vector<256xf32>
    %15 = vector.multi_reduction <add>, %14, %cst_9 [0] : vector<4x256xf32> to vector<256xf32>
    %16 = vector.shape_cast %15 : vector<256xf32> to vector<1x256xf32>
    %17 = tpu.reciprocal %16 {approx = true} : vector<1x256xf32> -> vector<1x256xf32>
    %18 = vector.broadcast %17 : vector<1x256xf32> to vector<4x256xf32>
    %19 = arith.mulf %14, %18 : vector<4x256xf32>
    %20 = tpu.iota {dimensions = array<i32: 0>} : vector<4x256xi32>
    %21 = vector.broadcast %6 : vector<1x256xi32> to vector<4x256xi32>
    %22 = arith.cmpi eq, %20, %21 : vector<4x256xi32>
    %cst_10 = arith.constant 0.000000e+00 : f32
    %23 = vector.broadcast %cst_10 : f32 to vector<4x256xf32>
    %24 = arith.select %22, %19, %23 : vector<4x256xi1>, vector<4x256xf32>
    %cst_11 = arith.constant dense<0.000000e+00> : vector<4xf32>
    %25 = vector.multi_reduction <add>, %24, %cst_11 [1] : vector<4x256xf32> to vector<4xf32>
    %26 = vector.shape_cast %25 : vector<4xf32> to vector<4x1xf32>
    %cst_12 = arith.constant 2.000000e+00 : f32
    %27 = vector.broadcast %cst_12 : f32 to vector<4x1xf32>
    %28 = arith.mulf %27, %26 : vector<4x1xf32>
    %cst_13 = arith.constant dense<0.000000e+00> : vector<4xf32>
    %29 = vector.multi_reduction <add>, %19, %cst_13 [1] : vector<4x256xf32> to vector<4xf32>
    %30 = vector.shape_cast %29 : vector<4xf32> to vector<4x1xf32>
    %31 = arith.extui %22 : vector<4x256xi1> to vector<4x256xi32>
    %32 = arith.sitofp %31 : vector<4x256xi32> to vector<4x256xf32>
    %cst_14 = arith.constant dense<0.000000e+00> : vector<4xf32>
    %33 = vector.multi_reduction <add>, %32, %cst_14 [1] : vector<4x256xf32> to vector<4xf32>
    %34 = vector.shape_cast %33 : vector<4xf32> to vector<4x1xf32>
    %35 = arith.addf %30, %34 : vector<4x1xf32>
    %36 = arith.mulf %19, %9 : vector<4x256xf32>
    %cst_15 = arith.constant dense<0.000000e+00> : vector<4xf32>
    %37 = vector.multi_reduction <add>, %36, %cst_15 [1] : vector<4x256xf32> to vector<4xf32>
    %38 = vector.shape_cast %37 : vector<4xf32> to vector<4x1xf32>
    %c0_16 = arith.constant 0 : index
    %c0_17 = arith.constant 0 : index
    %c0_18 = arith.constant 0 : index
    %39 = vector.load %arg5[%c0_16, %c0_17, %c0_18] : memref<1x8x128xf32, #tpu.memory_space<vmem>>, vector<1x4x1xf32>
    %40 = vector.shape_cast %39 : vector<1x4x1xf32> to vector<4x1xf32>
    %41 = arith.addf %40, %28 : vector<4x1xf32>
    %c0_19 = arith.constant 0 : index
    %c0_20 = arith.constant 0 : index
    %c0_21 = arith.constant 0 : index
    %42 = vector.load %arg5[%c0_19, %c0_20, %c0_21] : memref<1x8x128xf32, #tpu.memory_space<vmem>>, vector<1x4x1xf32>
    %43 = vector.shape_cast %42 : vector<1x4x1xf32> to vector<4x1xf32>
    %44 = vector.shape_cast %41 : vector<4x1xf32> to vector<1x4x1xf32>
    tpu.vector_store %arg5[%c0_19, %c0_20, %c0_21], %44 {strides = array<i32>} : memref<1x8x128xf32, #tpu.memory_space<vmem>>, vector<1x4x1xf32>,
    %c0_22 = arith.constant 0 : index
    %c0_23 = arith.constant 0 : index
    %c1 = arith.constant 1 : index
    %45 = vector.load %arg5[%c0_22, %c0_23, %c1] : memref<1x8x128xf32, #tpu.memory_space<vmem>>, vector<1x4x1xf32>
    %46 = vector.shape_cast %45 : vector<1x4x1xf32> to vector<4x1xf32>
    %47 = arith.addf %46, %35 : vector<4x1xf32>
    %c0_24 = arith.constant 0 : index
    %c0_25 = arith.constant 0 : index
    %c1_26 = arith.constant 1 : index
    %48 = vector.load %arg5[%c0_24, %c0_25, %c1_26] : memref<1x8x128xf32, #tpu.memory_space<vmem>>, vector<1x4x1xf32>
    %49 = vector.shape_cast %48 : vector<1x4x1xf32> to vector<4x1xf32>
    %50 = vector.shape_cast %47 : vector<4x1xf32> to vector<1x4x1xf32>
    tpu.vector_store %arg5[%c0_24, %c0_25, %c1_26], %50 {strides = array<i32>} : memref<1x8x128xf32, #tpu.memory_space<vmem>>, vector<1x4x1xf32>,
    %c0_27 = arith.constant 0 : index
    %c0_28 = arith.constant 0 : index
    %c2 = arith.constant 2 : index
    %51 = vector.load %arg5[%c0_27, %c0_28, %c2] : memref<1x8x128xf32, #tpu.memory_space<vmem>>, vector<1x4x1xf32>
    %52 = vector.shape_cast %51 : vector<1x4x1xf32> to vector<4x1xf32>
    %53 = arith.addf %52, %38 : vector<4x1xf32>
    %c0_29 = arith.constant 0 : index
    %c0_30 = arith.constant 0 : index
    %c2_31 = arith.constant 2 : index
    %54 = vector.load %arg5[%c0_29, %c0_30, %c2_31] : memref<1x8x128xf32, #tpu.memory_space<vmem>>, vector<1x4x1xf32>
    %55 = vector.shape_cast %54 : vector<1x4x1xf32> to vector<4x1xf32>
    %56 = vector.shape_cast %53 : vector<4x1xf32> to vector<1x4x1xf32>
    tpu.vector_store %arg5[%c0_29, %c0_30, %c2_31], %56 {strides = array<i32>} : memref<1x8x128xf32, #tpu.memory_space<vmem>>, vector<1x4x1xf32>,
    return
  }
  func.func @transform_0(%arg0: i32, %arg1: i32) -> (i32, i32, i32) {
    %c0_i32 = arith.constant 0 : i32
    %c0_i32_0 = arith.constant 0 : i32
    return %arg0, %c0_i32, %arg1 : i32, i32, i32
  }
  func.func @transform_1(%arg0: i32, %arg1: i32) -> (i32, i32, i32) {
    %c0_i32 = arith.constant 0 : i32
    %c0_i32_0 = arith.constant 0 : i32
    return %arg0, %c0_i32, %arg1 : i32, i32, i32
  }
  func.func @transform_2(%arg0: i32, %arg1: i32) -> (i32, i32, i32) {
    %c0_i32 = arith.constant 0 : i32
    %c0_i32_0 = arith.constant 0 : i32
    return %arg0, %c0_i32, %arg1 : i32, i32, i32
  }
  func.func @transform_3(%arg0: i32, %arg1: i32) -> (i32, i32, i32) {
    %c0_i32 = arith.constant 0 : i32
    %c0_i32_0 = arith.constant 0 : i32
    %c0_i32_1 = arith.constant 0 : i32
    return %arg0, %c0_i32, %c0_i32_0 : i32, i32, i32
  }
}

</mosaic_0001>

<bundles_post_ra>
// kernel: custom-call
= control target key start
LH: loop header
LB: loop body
LE: loop exit
PB: predicated region body
PF: predicated region fallthrough
CT: control target
= control target key end

     0   :  { %s6_s0 = inlined_call_operand.vmem [shape: bf16[2,4,16,16], index: 0, kind: output, shape index: {}]  }

// kernel: rw_gradual_dice_loss.1
= control target key start
LH: loop header
LB: loop body
LE: loop exit
PB: predicated region body
PF: predicated region fallthrough
CT: control target
= control target key end

     0   :  { %s577_s12 = smov 0   ;;  %s579_s13 = smov 0   ;;  %s656_s0 = inlined_call_operand.vmem [shape: f32[2,4,256], index: 0, kind: input, shape index: {}]   ;;  %s657_s1 = inlined_call_operand.vmem [shape: s32[2,1,256], index: 1, kind: input, shape index: {}]   ;;  %s658_s2 = inlined_call_operand.vmem [shape: bf16[2,4,256], index: 2, kind: input, shape index: {}]   ;;  %s659_s3 = inlined_call_operand.vmem [shape: f32[2,8,128], index: 3, kind: output, shape index: {}]  }
   0x1   :  { %s581_s14 = smov 0  }
   0x2 LB: > { %s25_s15 = sadd.s32 1, %s550_s13  ;;  %p487_p0 = scmp.ge.s32.totalorder %s554_s14, 1  ;;  %s554_s14 = sphi %s581_s14, %s13_s14   ;;  %s550_s13 = sphi %s579_s13, %s661_s13   ;;  %s546_s12 = sphi %s577_s12, %s660_s12  }
   0x3   : > { %p27_p1 = scmp.ge.s32.totalorder %s25_s15, 2  ;;  %p189_p2 = scmp.lt.s32.totalorder %s554_s14, 3 }
   0x5   : > { %s663_s15 = smov (%p27_p1, %s25_s15), 0  ;;  %p190_p3 = pnand %p487_p0, %p189_p2 }
   0x6   : > { %p234_p4 = scmp.lt.s32.totalorder (!%p190_p3), %s546_s12, 1  ;;  %v324_v0 = vlaneseq (!%p190_p3)  ;;  %vm278_vm0 = vcmask (!%p190_p3), 1043456   ;;  %v556_v10 = vmov (!%p190_p3), 0.0   ;;  %vm373_vm3 = vcmask (!%p190_p3), 3072  }
   0x7   : > { %193 = sbr.rel (%p190_p3) target bundleno = 253 (0xfd), region = 32  ;;  %vm377_vm4 = vcmask (!%p190_p3), 11272   ;;  %vm381_vm5 = vcmask (!%p190_p3), 19472  }
   0x8   : > { %v597_v1 = vshrl.u32 (!%p190_p3), %v324_v0, 7 }
   0xa   : > { %v328_v2 = vsub.s32 (!%p190_p3), 0, %v597_v1  ;;  %v332_v3 = vsub.s32 (!%p190_p3), 1, %v597_v1 }
   0xe   : > { %s665_s12 = smov (!%p234_p4, %s546_s12), 1 }
   0xf   : > { %s498_s16 = sshll.u32 %s665_s12, 3  ;;  %s490_s17 = sshll.u32 %s665_s12, 1 }
  0x10   : > { %s241_s20 = scalar_lea.vmem %s656_s0, %s498_s16  ;;  %s250_s23 = scalar_lea.vmem %s657_s1, %s490_s17 }
  0x11   : > { %s612_s26 = scalar_lea.vmem %s659_s3, %s498_s16  ;;  %v271_v4 = vld [vmem:[%s241_s20] sm:$0xff]  ;;  %s499_s27 = sshll.u32 %s665_s12, 2 }
  0x12   : > { %v272_v5 = vld [vmem:[%s250_s23] sm:$0x3]  ;;  %v276_v6 = vcombine.high %v271_v4, %v271_v4  ;;  %v279_v7 = vsel %vm278_vm0, %v271_v4, -inf  ;;  %270 = vst [vmem:[%s612_s26] sm:$0xff] %v556_v10  ;;  %s260_s30 = scalar_lea.vmem %s658_s2, %s499_s27 }
  0x13   : > { %v329_v8 = vrot.slane %v272_v5, %v328_v2  ;;  %v333_v9 = vrot.slane %v272_v5, %v332_v3  ;;  %v280_v11 = vrot.slane %v279_v7, 4  ;;  %v273_v49 = vld [vmem:[%s260_s30] sm:$0xf] }
  0x14   : > { %v286_v12 = vsel %vm278_vm0, %v276_v6, -inf  ;;  %v274_v52 = vunpack.c.l.bf16 %v273_v49 }
  0x15   : > { %vm334_vm1 = vcmp.eq.s32.totalorder %v597_v1, %v329_v8  ;;  %vm335_vm2 = vcmp.eq.s32.totalorder %v597_v1, %v333_v9  ;;  %v281_v13 = vmax.f32 %v279_v7, %v280_v11  ;;  %v287_v14 = vrot.slane %v286_v12, 4 }
  0x16   : > { %v494_v15 = vsel %vm334_vm1, 1.0, %v556_v10  ;;  %v495_v16 = vsel %vm335_vm2, 1.0, %v556_v10 }
  0x17   : > { %v356_v17 = vsel %vm278_vm0, %v494_v15, 0.0  ;;  %v357_v18 = vsel %vm278_vm0, %v495_v16, 0.0  ;;  %v282_v19 = vrot.slane %v281_v13, 2  ;;  %v288_v20 = vmax.f32 %v286_v12, %v287_v14 }
  0x18   : > { %v358_v21 = vadd.f32 %v357_v18, %v356_v17 }
  0x19   : > { %v283_v22 = vmax.f32 %v281_v13, %v282_v19  ;;  %v289_v23 = vrot.slane %v288_v20, 2  ;;  %v371_v1 = vld [vmem:[%s612_s26] sm:$0xf] }
  0x1a   : > { %359 = vadd.xlane.f32.xlu1 %v358_v21 }
  0x1b   : > { %v284_v24 = vrot.slane %v283_v22, 1  ;;  %v290_v25 = vmax.f32 %v288_v20, %v289_v23 }
  0x1d   : > { %v285_v26 = vmax.f32 %v283_v22, %v284_v24  ;;  %v291_v27 = vrot.slane %v290_v25, 1 }
  0x1f   : > { %v292_v28 = vmax.f32 %v290_v25, %v291_v27 }
  0x21   : > { %v295_v29 = vcombine.low %v285_v26, %v292_v28 }
  0x23   : > { %v297_v30 = vsub.f32 %v271_v4, %v295_v29 }
  0x25   : > { %v298_v31 = vmul.f32 1.442695, %v297_v30 }
  0x27   : > { %526 = vpow2.f32 %v298_v31 }
  0x31   : > { %v527_v32 = vpop.eup %526 }
  0x32   : > { %v301_v33 = vcombine.high %v527_v32, %v527_v32  ;;  %v303_v34 = vsel %vm278_vm0, %v527_v32, 0.0 }
  0x33   : > { %v304_v35 = vrot.slane %v303_v34, 4 }
  0x34   : > { %v310_v36 = vsel %vm278_vm0, %v301_v33, 0.0 }
  0x35   : > { %v305_v37 = vadd.f32 %v304_v35, %v303_v34  ;;  %v311_v38 = vrot.slane %v310_v36, 4 }
  0x37   : > { %v306_v39 = vrot.slane %v305_v37, 2  ;;  %v312_v40 = vadd.f32 %v311_v38, %v310_v36 }
  0x39   : > { %v307_v41 = vadd.f32 %v306_v39, %v305_v37  ;;  %v313_v42 = vrot.slane %v312_v40, 2 }
  0x3b   : > { %v308_v43 = vrot.slane %v307_v41, 1  ;;  %v314_v44 = vadd.f32 %v313_v42, %v312_v40 }
  0x3d   : > { %v309_v45 = vadd.f32 %v308_v43, %v307_v41  ;;  %v315_v46 = vrot.slane %v314_v44, 1 }
  0x3f   : > { %v316_v47 = vadd.f32 %v315_v46, %v314_v44  ;;  %528 = vrcp.f32 %v309_v45 }
  0x41   : > { %530 = vrcp.f32 %v316_v47 }
  0x49   : > { %v529_v48 = vpop.eup %528 }
  0x4b   : > { %v531_v50 = vpop.eup %530 }
  0x4c   : > { %v321_v51 = vcombine.low %v529_v48, %v531_v50 }
  0x4e   : > { %v323_v53 = vmul.f32 %v527_v32, %v321_v51 }
  0x50   : > { %v337_v54 = vcombine.high %v323_v53, %v323_v53  ;;  %v339_v55 = vsel %vm334_vm1, %v323_v53, 0.0  ;;  %v362_v56 = vmul.f32 %v323_v53, %v274_v52  ;;  %v347_v62 = vsel %vm278_vm0, %v323_v53, 0.0 }
  0x51   : > { %v341_v57 = vsel %vm278_vm0, %v339_v55, 0.0 }
  0x52   : > { %v340_v58 = vsel %vm335_vm2, %v337_v54, 0.0  ;;  %v364_v59 = vcombine.high %v362_v56, %v362_v56  ;;  %v366_v60 = vsel %vm278_vm0, %v362_v56, 0.0  ;;  %v348_v63 = vsel %vm278_vm0, %v337_v54, 0.0 }
  0x53   : > { %v342_v61 = vsel %vm278_vm0, %v340_v58, 0.0  ;;  %v349_v4 = vadd.f32 %v348_v63, %v347_v62 }
  0x54   : > { %v343_v0 = vadd.f32 %v342_v61, %v341_v57  ;;  %v367_v2 = vsel %vm278_vm0, %v364_v59, 0.0 }
  0x55   : > { %v368_v3 = vadd.f32 %v367_v2, %v366_v60 }
  0x56   : > { %344 = vadd.xlane.f32.xlu0 %v343_v0 }
  0x57   : > { %369 = vadd.xlane.f32.xlu1 %v368_v3 }
  0x5a   : > { %350 = vadd.xlane.f32.xlu0 %v349_v4 }
  0xa7   : > { %v360_v8 = vpop.xlane.xlu1 %359 }
  0xe3   : > { %v345_v5 = vpop.xlane.xlu0 %344 }
  0xe4   : > { %v346_v6 = vmul.f32 2.0, %v345_v5  ;;  %v370_v13 = vpop.xlane.xlu1 %369 }
  0xe6   : > { %v372_v7 = vadd.f32 %v371_v1, %v346_v6 }
  0xe7   : > { %v351_v9 = vpop.xlane.xlu0 %350 }
  0xe8   : > { %374 = vst.msk [vmem:[%s612_s26] sm:$0xf] %vm373_vm3, %v372_v7  ;;  %v361_v10 = vadd.f32 %v360_v8, %v351_v9 }
  0xef   : > { %v375_v11 = vld [vmem:[%s612_s26] sm:$0xf] }
  0xf0   : > { %v376_v12 = vadd.f32 %v375_v11, %v361_v10 }
  0xf2   : > { %378 = vst.msk [vmem:[%s612_s26] sm:$0xf] %vm377_vm4, %v376_v12 }
  0xf9   : > { %v379_v14 = vld [vmem:[%s612_s26] sm:$0xf] }
  0xfa   : > { %v380_v15 = vadd.f32 %v379_v14, %v370_v13 }
  0xfc   : > { %382 = vst.msk [vmem:[%s612_s26] sm:$0xf] %vm381_vm5, %v380_v15 }
  0xfd PF: > { %s13_s14 = sadd.s32 1, %s554_s14   ;;  %s660_s12 = smov %s550_s13 }
  0xfe   : > { %p10_p5 = scmp.ge.s32.totalorder %s13_s14, 4   ;;  %s661_s13 = smov %s663_s15 }
 0x100   :  { %12 = sbr.rel (!%p10_p5) target bundleno = 2 (0x2), region = 72 }

</bundles_post_ra>
